<compile_context>
chip_gen: v7x
topology: tpu7x:2x2x1
jax: 0.10.0
libtpu: 0.0.40
codegen_flags: <defaults>
</compile_context>

<pallas_src>
import jax
import jax.numpy as jnp
from jax.experimental import pallas as pl
from jax.experimental.pallas import tpu as pltpu


def _round_up(n, m):
    return ((n + m - 1) // m) * m


def policy_kernel(x_ref, w1_ref, b1_ref, w2_ref, b2_ref, w3_ref, b3_ref, o_ref):
    # x_ref: (tb, in_p) bf16 tile of the batch; weights are full arrays in VMEM
    # (constant block index -> resident across grid steps).
    x = x_ref[...]

    # Layer 1: Linear(in_p -> mid) + LeakyReLU(0.01). MXU matmul, f32 accumulate.
    h1 = jnp.dot(x, w1_ref[...], preferred_element_type=jnp.float32) + b1_ref[...]
    h1 = jnp.maximum(h1, 0.01 * h1)  # LeakyReLU via max: 2 VALU ops/elem

    # Layer 2: Linear(mid -> mid) + LeakyReLU(0.01)
    h2 = jnp.dot(h1.astype(w2_ref.dtype), w2_ref[...],
                 preferred_element_type=jnp.float32) + b2_ref[...]
    h2 = jnp.maximum(h2, 0.01 * h2)

    # Layer 3: Linear(mid -> out_p) + Tanh  (padded lanes: 0*w + 0 -> tanh(0)=0)
    h3 = jnp.dot(h2.astype(w3_ref.dtype), w3_ref[...],
                 preferred_element_type=jnp.float32) + b3_ref[...]
    y = jnp.tanh(h3)

    # L2 normalize along last dim via rsqrt (EUP slot, no vector divide).
    # No epsilon: matches the PyTorch reference's x / x.norm(dim=-1) exactly.
    inv_norm = jax.lax.rsqrt(jnp.sum(y * y, axis=-1, keepdims=True))
    o_ref[...] = (y * inv_norm).astype(o_ref.dtype)


def prepare_params(params, matmul_dtype=jnp.bfloat16):
    """Pad feature dims to a multiple of 128 and cast weights to the matmul
    dtype ONCE. The returned dict should be cached and reused across calls."""
    in_dim, mid_dim = params["w1"].shape
    out_dim = params["w3"].shape[1]
    in_p = _round_up(in_dim, 128)
    out_p = _round_up(out_dim, 128)
    return {
        "w1": jnp.pad(params["w1"], ((0, in_p - in_dim), (0, 0))).astype(matmul_dtype),
        "b1": params["b1"].reshape(1, mid_dim).astype(jnp.float32),
        "w2": params["w2"].astype(matmul_dtype),
        "b2": params["b2"].reshape(1, mid_dim).astype(jnp.float32),
        "w3": jnp.pad(params["w3"], ((0, 0), (0, out_p - out_dim))).astype(matmul_dtype),
        "b3": jnp.pad(params["b3"].reshape(1, out_dim),
                      ((0, 0), (0, out_p - out_dim))).astype(jnp.float32),
        "in_dim": in_dim,
        "out_dim": out_dim,
    }


def policy_forward(x, prepped, *, tb=None, return_padded=False):
    """x: (B, in_dim) float32 (or pre-padded (B, in_p) bf16).
    prepped: output of prepare_params (cached padded bf16 weights)."""
    B = x.shape[0]
    in_dim = prepped["in_dim"]
    out_dim = prepped["out_dim"]
    matmul_dtype = prepped["w1"].dtype
    in_p, mid_dim = prepped["w1"].shape
    out_p = prepped["w3"].shape[1]
    assert x.shape[1] in (in_dim, in_p), "unexpected feature dim"

    # Batch tile: whole batch for small B (grid=(1,), weight-DMA-bound regime);
    # 256/512-row tiles for larger B so the MXU M dim is filled, grid >= 2
    # keeps both v7x TensorCores busy, and the f32 h1/h2 temporaries stay well
    # inside every generation's scoped VMEM limit.
    if tb is None:
        if B <= 256:
            tb = B
        elif B <= 1024:
            tb = 256
        else:
            tb = 512
    tb = min(tb, B)
    if tb < B:
        assert tb % 8 == 0, "batch tile must be a multiple of 8 when tiling"
    Bp = _round_up(B, tb)
    grid = (Bp // tb,)

    # Input: accept pre-padded bf16 x as-is; otherwise pad/cast (tiny, fuses
    # under the caller's jit). Zero feature-padding is a mathematical no-op;
    # zero batch-padding rows are dropped at the end.
    xp = x.astype(matmul_dtype) if x.dtype != matmul_dtype else x
    pad_rows, pad_cols = Bp - B, in_p - xp.shape[1]
    if pad_rows or pad_cols:
        xp = jnp.pad(xp, ((0, pad_rows), (0, pad_cols)))

    w1, b1 = prepped["w1"], prepped["b1"]
    w2, b2 = prepped["w2"], prepped["b2"]
    w3, b3 = prepped["w3"], prepped["b3"]

    # Weights/biases: full array every grid step (constant block index ->
    # Pallas keeps them resident across steps).
    full = lambda shape: pl.BlockSpec(shape, lambda i: tuple(0 for _ in shape))

    itemsize = jnp.dtype(matmul_dtype).itemsize
    cost = pl.CostEstimate(
        flops=2 * Bp * (in_p * mid_dim + mid_dim * mid_dim + mid_dim * out_p),
        transcendentals=Bp * (out_p + 1),  # tanh row + rsqrt per row
        bytes_accessed=(
            (xp.size + w1.size + w2.size + w3.size) * itemsize
            + (b1.size + b2.size + b3.size) * 4
            + Bp * out_p * 4
        ),
    )

    out_padded = pl.pallas_call(
        policy_kernel,
        out_shape=jax.ShapeDtypeStruct((Bp, out_p), jnp.float32),
        grid_spec=pltpu.PrefetchScalarGridSpec(
            num_scalar_prefetch=0,
            grid=grid,
            in_specs=[
                pl.BlockSpec((tb, in_p), lambda i: (i, 0)),   # x tile
                full((in_p, mid_dim)),                        # w1
                full((1, mid_dim)),                           # b1
                full((mid_dim, mid_dim)),                     # w2
                full((1, mid_dim)),                           # b2
                full((mid_dim, out_p)),                       # w3
                full((1, out_p)),                             # b3
            ],
            out_specs=pl.BlockSpec((tb, out_p), lambda i: (i, 0)),
        ),
        compiler_params=pltpu.CompilerParams(
            dimension_semantics=("parallel",),
        ),
        cost_estimate=cost,
    )(xp, w1, b1, w2, b2, w3, b3)

    if return_padded:
        # Padded output lanes are exactly zero; padded rows (if any) dropped.
        return out_padded if Bp == B else out_padded[:B]
    return out_padded[:B, :out_dim]


def init_params(key, in_dim, mid_dim, out_dim):
    """Deterministic synthetic init (PyTorch-style uniform fan-in bounds)."""
    ks = jax.random.split(key, 6)

    def lin(kw, kb, fan_in, fan_out):
        bound = 1.0 / jnp.sqrt(fan_in)
        w = jax.random.uniform(kw, (fan_in, fan_out), jnp.float32, -bound, bound)
        b = jax.random.uniform(kb, (1, fan_out), jnp.float32, -bound, bound)
        return w, b

    w1, b1 = lin(ks[0], ks[1], in_dim, mid_dim)
    w2, b2 = lin(ks[2], ks[3], mid_dim, mid_dim)
    w3, b3 = lin(ks[4], ks[5], mid_dim, out_dim)
    return dict(w1=w1, b1=b1, w2=w2, b2=b2, w3=w3, b3=b3)


def policy_reference_f32(x, p):
    h = x @ p["w1"] + p["b1"]
    h = jnp.where(h >= 0, h, 0.01 * h)
    h = h @ p["w2"] + p["b2"]
    h = jnp.where(h >= 0, h, 0.01 * h)
    y = jnp.tanh(h @ p["w3"] + p["b3"])
    return y / jnp.linalg.norm(y, axis=-1, keepdims=True)


def policy_reference_mixed(x, p, dtype=jnp.bfloat16):
    """Same bf16-operand / f32-accumulate recipe the kernel uses."""
    f32 = jnp.float32
    h = jnp.dot(x.astype(dtype), p["w1"].astype(dtype),
                preferred_element_type=f32) + p["b1"]
    h = jnp.where(h >= 0, h, 0.01 * h)
    h = jnp.dot(h.astype(dtype), p["w2"].astype(dtype),
                preferred_element_type=f32) + p["b2"]
    h = jnp.where(h >= 0, h, 0.01 * h)
    y = jnp.tanh(jnp.dot(h.astype(dtype), p["w3"].astype(dtype),
                         preferred_element_type=f32) + p["b3"])
    return y / jnp.linalg.norm(y, axis=-1, keepdims=True)


if __name__ == "__main__":
    # Module defaults: in_dim=125, out_dim=100, mid_dim=512. Small batch=16.
    in_dim, mid_dim, out_dim = 125, 512, 100

    key = jax.random.PRNGKey(0)
    kx, kp, kx2 = jax.random.split(key, 3)
    params = init_params(kp, in_dim, mid_dim, out_dim)
    prepped = prepare_params(params)  # pad+cast weights ONCE, reused below

    fwd = jax.jit(lambda xx: policy_forward(xx, prepped))

    # Case 1: tiny batch (weight-DMA-bound regime, tb=B, grid=(1,)).
    B = 16
    x = jax.random.normal(kx, (B, in_dim), jnp.float32)
    out = jax.block_until_ready(fwd(x))
    assert out.shape == (B, out_dim)
    assert bool(jnp.all(jnp.isfinite(out))), "non-finite output"

    # Tight check vs. a reference using the same mixed-precision recipe.
    ref_mixed = policy_reference_mixed(x, params)
    assert jnp.allclose(out, ref_mixed, atol=1e-4, rtol=1e-4), \
        "mismatch vs mixed-precision reference"
    # Looser check vs. the pure-f32 PyTorch-equivalent reference (bf16 matmul
    # operands introduce ~1e-3-scale differences).
    ref_f32 = policy_reference_f32(x, params)
    assert jnp.allclose(out, ref_f32, atol=3e-2, rtol=3e-2), \
        "mismatch vs f32 reference"

    # Case 2: non-tile-divisible batch exercising the bounded-tile / padded
    # remainder path (tb=256, Bp=512, grid=(2,)).
    B2 = 272
    x2 = jax.random.normal(kx2, (B2, in_dim), jnp.float32)
    out2 = jax.block_until_ready(fwd(x2))
    assert out2.shape == (B2, out_dim)
    assert bool(jnp.all(jnp.isfinite(out2))), "non-finite output (tiled path)"
    ref2 = policy_reference_mixed(x2, params)
    assert jnp.allclose(out2, ref2, atol=1e-4, rtol=1e-4), \
        "mismatch vs mixed-precision reference (tiled path)"

    print("KERNEL_OK")
</pallas_src>

<mosaic_0001>
module attributes {stable_mosaic.version = 11 : i64} {
  func.func @policy_kernel(%arg0: i32, %arg1: memref<16x128xbf16, #tpu.memory_space<vmem>>, %arg2: memref<128x512xbf16, #tpu.memory_space<vmem>>, %arg3: memref<1x512xf32, #tpu.memory_space<vmem>>, %arg4: memref<512x512xbf16, #tpu.memory_space<vmem>>, %arg5: memref<1x512xf32, #tpu.memory_space<vmem>>, %arg6: memref<512x128xbf16, #tpu.memory_space<vmem>>, %arg7: memref<1x128xf32, #tpu.memory_space<vmem>>, %arg8: memref<16x128xf32, #tpu.memory_space<vmem>>) attributes {dimension_semantics = [#tpu.dimension_semantics<parallel>], iteration_bounds = array<i64: 1>, scalar_prefetch = 0 : i64, scratch_operands = 0 : i64, tpu.core_type = #tpu.core_type<tc>, window_params = [{transform_indices = @transform_0, window_bounds = array<i64: 16, 128>}, {pipeline_mode = #tpu.pipeline_mode<synchronous>, transform_indices = @transform_1, window_bounds = array<i64: 128, 512>}, {pipeline_mode = #tpu.pipeline_mode<synchronous>, transform_indices = @transform_2, window_bounds = array<i64: 1, 512>}, {pipeline_mode = #tpu.pipeline_mode<synchronous>, transform_indices = @transform_3, window_bounds = array<i64: 512, 512>}, {pipeline_mode = #tpu.pipeline_mode<synchronous>, transform_indices = @transform_4, window_bounds = array<i64: 1, 512>}, {pipeline_mode = #tpu.pipeline_mode<synchronous>, transform_indices = @transform_5, window_bounds = array<i64: 512, 128>}, {pipeline_mode = #tpu.pipeline_mode<synchronous>, transform_indices = @transform_6, window_bounds = array<i64: 1, 128>}, {transform_indices = @transform_7, window_bounds = array<i64: 16, 128>}]} {
    %c0 = arith.constant 0 : index
    %c0_0 = arith.constant 0 : index
    %0 = vector.load %arg1[%c0, %c0_0] : memref<16x128xbf16, #tpu.memory_space<vmem>>, vector<16x128xbf16>
    %c0_1 = arith.constant 0 : index
    %c0_2 = arith.constant 0 : index
    %1 = vector.load %arg2[%c0_1, %c0_2] : memref<128x512xbf16, #tpu.memory_space<vmem>>, vector<128x512xbf16>
    %cst = arith.constant dense<0.000000e+00> : vector<16x512xf32>
    %2 = tpu.matmul %0, %1, %cst {dimension_numbers = #tpu.dot_dimension_numbers<[1], [0], [0], [1], [0, 0, 1, 1], [], []>} : vector<16x128xbf16>, vector<128x512xbf16>, vector<16x512xf32> -> vector<16x512xf32>
    %c0_3 = arith.constant 0 : index
    %c0_4 = arith.constant 0 : index
    %3 = vector.load %arg3[%c0_3, %c0_4] : memref<1x512xf32, #tpu.memory_space<vmem>>, vector<1x512xf32>
    %4 = vector.broadcast %3 : vector<1x512xf32> to vector<16x512xf32>
    %5 = arith.addf %2, %4 : vector<16x512xf32>
    %cst_5 = arith.constant 0.00999999977 : f32
    %6 = vector.broadcast %cst_5 : f32 to vector<16x512xf32>
    %7 = arith.mulf %6, %5 : vector<16x512xf32>
    %8 = arith.maximumf %5, %7 : vector<16x512xf32>
    %9 = arith.truncf %8 : vector<16x512xf32> to vector<16x512xbf16>
    %c0_6 = arith.constant 0 : index
    %c0_7 = arith.constant 0 : index
    %10 = vector.load %arg4[%c0_6, %c0_7] : memref<512x512xbf16, #tpu.memory_space<vmem>>, vector<512x512xbf16>
    %cst_8 = arith.constant dense<0.000000e+00> : vector<16x512xf32>
    %11 = tpu.matmul %9, %10, %cst_8 {dimension_numbers = #tpu.dot_dimension_numbers<[1], [0], [0], [1], [0, 0, 1, 1], [], []>} : vector<16x512xbf16>, vector<512x512xbf16>, vector<16x512xf32> -> vector<16x512xf32>
    %c0_9 = arith.constant 0 : index
    %c0_10 = arith.constant 0 : index
    %12 = vector.load %arg5[%c0_9, %c0_10] : memref<1x512xf32, #tpu.memory_space<vmem>>, vector<1x512xf32>
    %13 = vector.broadcast %12 : vector<1x512xf32> to vector<16x512xf32>
    %14 = arith.addf %11, %13 : vector<16x512xf32>
    %cst_11 = arith.constant 0.00999999977 : f32
    %15 = vector.broadcast %cst_11 : f32 to vector<16x512xf32>
    %16 = arith.mulf %15, %14 : vector<16x512xf32>
    %17 = arith.maximumf %14, %16 : vector<16x512xf32>
    %18 = arith.truncf %17 : vector<16x512xf32> to vector<16x512xbf16>
    %c0_12 = arith.constant 0 : index
    %c0_13 = arith.constant 0 : index
    %19 = vector.load %arg6[%c0_12, %c0_13] : memref<512x128xbf16, #tpu.memory_space<vmem>>, vector<512x128xbf16>
    %cst_14 = arith.constant dense<0.000000e+00> : vector<16x128xf32>
    %20 = tpu.matmul %18, %19, %cst_14 {dimension_numbers = #tpu.dot_dimension_numbers<[1], [0], [0], [1], [0, 0, 1, 1], [], []>} : vector<16x512xbf16>, vector<512x128xbf16>, vector<16x128xf32> -> vector<16x128xf32>
    %c0_15 = arith.constant 0 : index
    %c0_16 = arith.constant 0 : index
    %21 = vector.load %arg7[%c0_15, %c0_16] : memref<1x128xf32, #tpu.memory_space<vmem>>, vector<1x128xf32>
    %22 = vector.broadcast %21 : vector<1x128xf32> to vector<16x128xf32>
    %23 = arith.addf %20, %22 : vector<16x128xf32>
    %24 = math.tanh %23 : vector<16x128xf32>
    %25 = arith.mulf %24, %24 : vector<16x128xf32>
    %cst_17 = arith.constant dense<0.000000e+00> : vector<16xf32>
    %26 = vector.multi_reduction <add>, %25, %cst_17 [1] : vector<16x128xf32> to vector<16xf32>
    %27 = vector.shape_cast %26 : vector<16xf32> to vector<16x1xf32>
    %28 = math.rsqrt %27 : vector<16x1xf32>
    %29 = vector.broadcast %28 : vector<16x1xf32> to vector<16x128xf32>
    %30 = arith.mulf %24, %29 : vector<16x128xf32>
    %c0_18 = arith.constant 0 : index
    %c0_19 = arith.constant 0 : index
    %31 = vector.load %arg8[%c0_18, %c0_19] : memref<16x128xf32, #tpu.memory_space<vmem>>, vector<16x128xf32>
    tpu.vector_store %arg8[%c0_18, %c0_19], %30 {strides = array<i32>} : memref<16x128xf32, #tpu.memory_space<vmem>>, vector<16x128xf32>,
    return
  }
  func.func @transform_0(%arg0: i32) -> (i32, i32) {
    %c0_i32 = arith.constant 0 : i32
    %c0_i32_0 = arith.constant 0 : i32
    return %arg0, %c0_i32 : i32, i32
  }
  func.func @transform_1(%arg0: i32) -> (i32, i32) {
    %c0_i32 = arith.constant 0 : i32
    %c0_i32_0 = arith.constant 0 : i32
    %c0_i32_1 = arith.constant 0 : i32
    return %c0_i32, %c0_i32_0 : i32, i32
  }
  func.func @transform_2(%arg0: i32) -> (i32, i32) {
    %c0_i32 = arith.constant 0 : i32
    %c0_i32_0 = arith.constant 0 : i32
    %c0_i32_1 = arith.constant 0 : i32
    return %c0_i32, %c0_i32_0 : i32, i32
  }
  func.func @transform_3(%arg0: i32) -> (i32, i32) {
    %c0_i32 = arith.constant 0 : i32
    %c0_i32_0 = arith.constant 0 : i32
    %c0_i32_1 = arith.constant 0 : i32
    return %c0_i32, %c0_i32_0 : i32, i32
  }
  func.func @transform_4(%arg0: i32) -> (i32, i32) {
    %c0_i32 = arith.constant 0 : i32
    %c0_i32_0 = arith.constant 0 : i32
    %c0_i32_1 = arith.constant 0 : i32
    return %c0_i32, %c0_i32_0 : i32, i32
  }
  func.func @transform_5(%arg0: i32) -> (i32, i32) {
    %c0_i32 = arith.constant 0 : i32
    %c0_i32_0 = arith.constant 0 : i32
    %c0_i32_1 = arith.constant 0 : i32
    return %c0_i32, %c0_i32_0 : i32, i32
  }
  func.func @transform_6(%arg0: i32) -> (i32, i32) {
    %c0_i32 = arith.constant 0 : i32
    %c0_i32_0 = arith.constant 0 : i32
    %c0_i32_1 = arith.constant 0 : i32
    return %c0_i32, %c0_i32_0 : i32, i32
  }
  func.func @transform_7(%arg0: i32) -> (i32, i32) {
    %c0_i32 = arith.constant 0 : i32
    %c0_i32_0 = arith.constant 0 : i32
    return %arg0, %c0_i32 : i32, i32
  }
}

</mosaic_0001>

<bundles_post_ra>
// kernel: _lambda_.1
= control target key start
LH: loop header
LB: loop body
LE: loop exit
PB: predicated region body
PF: predicated region fallthrough
CT: control target
= control target key end

     0   :  { %v2276_v2 = vmov 0   ;;  %s2946_s0 = inlined_call_operand.vmem [shape: bf16[16,128], index: 0, kind: input, shape index: {}]   ;;  %s2947_s1 = inlined_call_operand.vmem [shape: bf16[128,512], index: 1, kind: input, shape index: {}]   ;;  %s2948_s2 = inlined_call_operand.vmem [shape: f32[1,512], index: 2, kind: input, shape index: {}]   ;;  %s2949_s3 = inlined_call_operand.vmem [shape: bf16[512,512], index: 3, kind: input, shape index: {}]   ;;  %s2950_s4 = inlined_call_operand.vmem [shape: f32[1,512], index: 4, kind: input, shape index: {}]   ;;  %s2951_s5 = inlined_call_operand.vmem [shape: bf16[512,128], index: 5, kind: input, shape index: {}]   ;;  %s2952_s6 = inlined_call_operand.vmem [shape: f32[1,128], index: 6, kind: input, shape index: {}]   ;;  %s2953_s7 = inlined_call_operand.hbm [shape: f32[16,128], index: 7, kind: output, shape index: {}]  }
   0x1   :  { %v1971_v0 = vld [vmem:[%s2947_s1 + $0x4] ss:$16 sps:$4 sm:$0xff]   ;;  %v1973_v1 = vld [vmem:[%s2947_s1] ss:$16 sps:$4 sm:$0xff]   ;;  %282 = vmatprep.mubr.bf16.mxu0 %v2276_v2  ;;  %325 = vmatprep.mubr.bf16.mxu1 %v2276_v2  ;;  %v1996_v10 = vld [vmem:[%s2947_s1 + $0xc] ss:$16 sps:$4 sm:$0xff]  }
   0x2   :  { %250 = vmatprep.subr.bf16.mxu0 %v1971_v0  ;;  %v1974_v3 = vld [vmem:[%s2947_s1 + $0x24] ss:$16 sps:$4 sm:$0xff]   ;;  %v1976_v4 = vld [vmem:[%s2947_s1 + $0x20] ss:$16 sps:$4 sm:$0xff]   ;;  %v1998_v11 = vld [vmem:[%s2947_s1 + $0x8] ss:$16 sps:$4 sm:$0xff]   ;;  %293 = vmatprep.subr.bf16.mxu1 %v1996_v10 }
   0x3   :  { %251 = vmatpush1.bf16.msra.mxu0 %v1973_v1  ;;  %v1977_v5 = vld [vmem:[%s2947_s1 + $0x44] ss:$16 sps:$4 sm:$0xff]   ;;  %v1979_v6 = vld [vmem:[%s2947_s1 + $0x40] ss:$16 sps:$4 sm:$0xff]   ;;  %v1999_v12 = vld [vmem:[%s2947_s1 + $0x2c] ss:$16 sps:$4 sm:$0xff]   ;;  %294 = vmatpush1.bf16.msra.mxu1 %v1998_v11 }
   0x4   :  { %252 = vmatprep.subr.bf16.mxu0 %v1974_v3  ;;  %v1980_v7 = vld [vmem:[%s2947_s1 + $0x64] ss:$16 sps:$4 sm:$0xff]   ;;  %v1982_v8 = vld [vmem:[%s2947_s1 + $0x60] ss:$16 sps:$4 sm:$0xff]   ;;  %v2001_v14 = vld [vmem:[%s2947_s1 + $0x28] ss:$16 sps:$4 sm:$0xff]   ;;  %295 = vmatprep.subr.bf16.mxu1 %v1999_v12 }
   0x5   :  { %v1983_v9 = vld [vmem:[%s2947_s1 + $0x84] ss:$16 sps:$4 sm:$0xff]   ;;  %v1985_v13 = vld [vmem:[%s2947_s1 + $0x80] ss:$16 sps:$4 sm:$0xff]   ;;  %v2002_v16 = vld [vmem:[%s2947_s1 + $0x4c] ss:$16 sps:$4 sm:$0xff]  }
   0x6   :  { %v1986_v15 = vld [vmem:[%s2947_s1 + $0xa4] ss:$16 sps:$4 sm:$0xff]   ;;  %v1988_v17 = vld [vmem:[%s2947_s1 + $0xa0] ss:$16 sps:$4 sm:$0xff]   ;;  %v2004_v18 = vld [vmem:[%s2947_s1 + $0x48] ss:$16 sps:$4 sm:$0xff]  }
   0x7   :  { %253 = vmatpush1.bf16.msra.mxu0 %v1976_v4  ;;  %296 = vmatpush1.bf16.msra.mxu1 %v2001_v14  ;;  %v1989_v19 = vld [vmem:[%s2947_s1 + $0xc4] ss:$16 sps:$4 sm:$0xff]   ;;  %v2005_v20 = vld [vmem:[%s2947_s1 + $0x6c] ss:$16 sps:$4 sm:$0xff]   ;;  %v1991_v21 = vld [vmem:[%s2947_s1 + $0xc0] ss:$16 sps:$4 sm:$0xff]  }
   0x8   :  { %254 = vmatprep.subr.bf16.mxu0 %v1977_v5  ;;  %297 = vmatprep.subr.bf16.mxu1 %v2002_v16  ;;  %v2007_v22 = vld [vmem:[%s2947_s1 + $0x68] ss:$16 sps:$4 sm:$0xff]   ;;  %v1992_v23 = vld [vmem:[%s2947_s1 + $0xe4] ss:$16 sps:$4 sm:$0xff]   ;;  %v2008_v24 = vld [vmem:[%s2947_s1 + $0x8c] ss:$16 sps:$4 sm:$0xff]  }
   0x9   :  { %v1994_v25 = vld [vmem:[%s2947_s1 + $0xe0] ss:$16 sps:$4 sm:$0xff]   ;;  %v2010_v26 = vld [vmem:[%s2947_s1 + $0x88] ss:$16 sps:$4 sm:$0xff]   ;;  %v2011_v27 = vld [vmem:[%s2947_s1 + $0xac] ss:$16 sps:$4 sm:$0xff]  }
   0xa   :  { %v2022_v28 = vld [vmem:[%s2949_s3 + $0x4] ss:$16 sps:$4 sm:$0xff]   ;;  %v2013_v30 = vld [vmem:[%s2947_s1 + $0xa8] ss:$16 sps:$4 sm:$0xff]   ;;  %v2020_v31 = vld [vmem:[%s2949_s3] ss:$16 sps:$4 sm:$0xff]  }
   0xb   :  { %255 = vmatpush1.bf16.msra.mxu0 %v1979_v6  ;;  %298 = vmatpush1.bf16.msra.mxu1 %v2004_v18  ;;  %v1995_v29 = vld [vmem:[%s2946_s0] sm:$0xff]   ;;  %v2014_v32 = vld [vmem:[%s2947_s1 + $0xcc] ss:$16 sps:$4 sm:$0xff]   ;;  %v2016_v34 = vld [vmem:[%s2947_s1 + $0xc8] ss:$16 sps:$4 sm:$0xff]  }
   0xc   :  { %256 = vmatprep.subr.bf16.mxu0 %v1980_v7  ;;  %299 = vmatprep.subr.bf16.mxu1 %v2005_v20  ;;  %v2028_v33 = vld [vmem:[%s2949_s3 + $0x24] ss:$16 sps:$4 sm:$0xff]   ;;  %v2026_v35 = vld [vmem:[%s2949_s3 + $0x20] ss:$16 sps:$4 sm:$0xff]   ;;  %v2017_v36 = vld [vmem:[%s2947_s1 + $0xec] ss:$16 sps:$4 sm:$0xff]  }
   0xd   :  { %v2034_v37 = vld [vmem:[%s2949_s3 + $0x44] ss:$16 sps:$4 sm:$0xff]   ;;  %v2019_v38 = vld [vmem:[%s2947_s1 + $0xe8] ss:$16 sps:$4 sm:$0xff]   ;;  %v2032_v39 = vld [vmem:[%s2949_s3 + $0x40] ss:$16 sps:$4 sm:$0xff]  }
   0xe   :  { %v2025_v40 = vld [vmem:[%s2949_s3 + $0xc] ss:$16 sps:$4 sm:$0xff]   ;;  %v2040_v41 = vld [vmem:[%s2949_s3 + $0x64] ss:$16 sps:$4 sm:$0xff]   ;;  %v2023_v42 = vld [vmem:[%s2949_s3 + $0x8] ss:$16 sps:$4 sm:$0xff]  }
   0xf   :  { %257 = vmatpush1.bf16.msra.mxu0 %v1982_v8  ;;  %300 = vmatpush1.bf16.msra.mxu1 %v2007_v22  ;;  %v2038_v43 = vld [vmem:[%s2949_s3 + $0x60] ss:$16 sps:$4 sm:$0xff]   ;;  %v2031_v44 = vld [vmem:[%s2949_s3 + $0x2c] ss:$16 sps:$4 sm:$0xff]   ;;  %v2046_v45 = vld [vmem:[%s2949_s3 + $0x84] ss:$16 sps:$4 sm:$0xff]  }
  0x10   :  { %258 = vmatprep.subr.bf16.mxu0 %v1983_v9  ;;  %301 = vmatprep.subr.bf16.mxu1 %v2008_v24  ;;  %v2029_v46 = vld [vmem:[%s2949_s3 + $0x28] ss:$16 sps:$4 sm:$0xff]   ;;  %v2044_v47 = vld [vmem:[%s2949_s3 + $0x80] ss:$16 sps:$4 sm:$0xff]   ;;  %v2037_v48 = vld [vmem:[%s2949_s3 + $0x4c] ss:$16 sps:$4 sm:$0xff]  }
  0x11   :  { %v2052_v49 = vld [vmem:[%s2949_s3 + $0xa4] ss:$16 sps:$4 sm:$0xff]   ;;  %v2035_v50 = vld [vmem:[%s2949_s3 + $0x48] ss:$16 sps:$4 sm:$0xff]   ;;  %v2050_v51 = vld [vmem:[%s2949_s3 + $0xa0] ss:$16 sps:$4 sm:$0xff]  }
  0x12   :  { %v2043_v52 = vld [vmem:[%s2949_s3 + $0x6c] ss:$16 sps:$4 sm:$0xff]   ;;  %v2058_v53 = vld [vmem:[%s2949_s3 + $0xc4] ss:$16 sps:$4 sm:$0xff]   ;;  %v2041_v54 = vld [vmem:[%s2949_s3 + $0x68] ss:$16 sps:$4 sm:$0xff]  }
  0x13   :  { %259 = vmatpush1.bf16.msra.mxu0 %v1985_v13  ;;  %302 = vmatpush1.bf16.msra.mxu1 %v2010_v26  ;;  %v2056_v55 = vld [vmem:[%s2949_s3 + $0xc0] ss:$16 sps:$4 sm:$0xff]   ;;  %v2049_v56 = vld [vmem:[%s2949_s3 + $0x8c] ss:$16 sps:$4 sm:$0xff]   ;;  %v2064_v57 = vld [vmem:[%s2949_s3 + $0xe4] ss:$16 sps:$4 sm:$0xff]  }
  0x14   :  { %260 = vmatprep.subr.bf16.mxu0 %v1986_v15  ;;  %303 = vmatprep.subr.bf16.mxu1 %v2011_v27  ;;  %v2047_v58 = vld [vmem:[%s2949_s3 + $0x88] ss:$16 sps:$4 sm:$0xff]   ;;  %v2062_v59 = vld [vmem:[%s2949_s3 + $0xe0] ss:$16 sps:$4 sm:$0xff]   ;;  %v2055_v60 = vld [vmem:[%s2949_s3 + $0xac] ss:$16 sps:$4 sm:$0xff]  }
  0x15   :  { %v2070_v61 = vld [vmem:[%s2949_s3 + $0x104] ss:$16 sps:$4 sm:$0xff]   ;;  %v2053_v62 = vld [vmem:[%s2949_s3 + $0xa8] ss:$16 sps:$4 sm:$0xff]   ;;  %v2068_v63 = vld [vmem:[%s2949_s3 + $0x100] ss:$16 sps:$4 sm:$0xff]  }
  0x16   :  { %v2061_v0 = vld [vmem:[%s2949_s3 + $0xcc] ss:$16 sps:$4 sm:$0xff]   ;;  %v2076_v1 = vld [vmem:[%s2949_s3 + $0x124] ss:$16 sps:$4 sm:$0xff]   ;;  %v2059_v2 = vld [vmem:[%s2949_s3 + $0xc8] ss:$16 sps:$4 sm:$0xff]  }
  0x17   :  { %261 = vmatpush1.bf16.msra.mxu0 %v1988_v17  ;;  %304 = vmatpush1.bf16.msra.mxu1 %v2013_v30  ;;  %v2074_v3 = vld [vmem:[%s2949_s3 + $0x120] ss:$16 sps:$4 sm:$0xff]   ;;  %v2067_v4 = vld [vmem:[%s2949_s3 + $0xec] ss:$16 sps:$4 sm:$0xff]   ;;  %v2082_v5 = vld [vmem:[%s2949_s3 + $0x144] ss:$16 sps:$4 sm:$0xff]  }
  0x18   :  { %262 = vmatprep.subr.bf16.mxu0 %v1989_v19  ;;  %305 = vmatprep.subr.bf16.mxu1 %v2014_v32  ;;  %v2065_v6 = vld [vmem:[%s2949_s3 + $0xe8] ss:$16 sps:$4 sm:$0xff]   ;;  %v2080_v7 = vld [vmem:[%s2949_s3 + $0x140] ss:$16 sps:$4 sm:$0xff]   ;;  %v2073_v8 = vld [vmem:[%s2949_s3 + $0x10c] ss:$16 sps:$4 sm:$0xff]  }
  0x19   :  { %v2088_v9 = vld [vmem:[%s2949_s3 + $0x164] ss:$16 sps:$4 sm:$0xff]   ;;  %v2071_v10 = vld [vmem:[%s2949_s3 + $0x108] ss:$16 sps:$4 sm:$0xff]   ;;  %v2086_v11 = vld [vmem:[%s2949_s3 + $0x160] ss:$16 sps:$4 sm:$0xff]  }
  0x1a   :  { %v2079_v12 = vld [vmem:[%s2949_s3 + $0x12c] ss:$16 sps:$4 sm:$0xff]   ;;  %v2094_v13 = vld [vmem:[%s2949_s3 + $0x184] ss:$16 sps:$4 sm:$0xff]   ;;  %v2077_v14 = vld [vmem:[%s2949_s3 + $0x128] ss:$16 sps:$4 sm:$0xff]  }
  0x1b   :  { %263 = vmatpush1.bf16.msra.mxu0 %v1991_v21  ;;  %306 = vmatpush1.bf16.msra.mxu1 %v2016_v34  ;;  %v2092_v15 = vld [vmem:[%s2949_s3 + $0x180] ss:$16 sps:$4 sm:$0xff]   ;;  %v2085_v16 = vld [vmem:[%s2949_s3 + $0x14c] ss:$16 sps:$4 sm:$0xff]   ;;  %v2083_v17 = vld [vmem:[%s2949_s3 + $0x148] ss:$16 sps:$4 sm:$0xff]  }
  0x1c   :  { %264 = vmatprep.subr.bf16.mxu0 %v1992_v23  ;;  %307 = vmatprep.subr.bf16.mxu1 %v2017_v36  ;;  %v2091_v18 = vld [vmem:[%s2949_s3 + $0x16c] ss:$16 sps:$4 sm:$0xff]   ;;  %v2089_v19 = vld [vmem:[%s2949_s3 + $0x168] ss:$16 sps:$4 sm:$0xff]  }
  0x1d   :  { %v2097_v20 = vld [vmem:[%s2949_s3 + $0x18c] ss:$16 sps:$4 sm:$0xff]   ;;  %v2095_v21 = vld [vmem:[%s2949_s3 + $0x188] ss:$16 sps:$4 sm:$0xff]  }
  0x1f   :  { %265 = vmatpush1.bf16.msra.mxu0 %v1994_v25  ;;  %308 = vmatpush1.bf16.msra.mxu1 %v2019_v38 }
  0x20   :  { %1146 = vmatprep.subr.bf16.mxu0 %v2022_v28  ;;  %1232 = vmatprep.subr.bf16.mxu1 %v2025_v40 }
  0x22   :  { %283 = vmatmul.mubr.bf16.vlgmr.msra.gmra.mrb[0].mxu0 %v1995_v29  ;;  %326 = vmatmul.mubr.bf16.vlgmr.msra.gmra.mrb[0].mxu1 %v1995_v29 }
  0x23   :  { %1147 = vmatpush1.bf16.msra.mxu0 %v2020_v31  ;;  %1233 = vmatpush1.bf16.msra.mxu1 %v2023_v42 }
  0x24   :  { %1148 = vmatprep.subr.bf16.mxu0 %v2028_v33  ;;  %1234 = vmatprep.subr.bf16.mxu1 %v2031_v44 }
  0x27   :  { %1149 = vmatpush1.bf16.msra.mxu0 %v2026_v35  ;;  %1235 = vmatpush1.bf16.msra.mxu1 %v2029_v46 }
  0x28   :  { %1150 = vmatprep.subr.bf16.mxu0 %v2034_v37  ;;  %1236 = vmatprep.subr.bf16.mxu1 %v2037_v48 }
  0x2b   :  { %1151 = vmatpush1.bf16.msra.mxu0 %v2032_v39  ;;  %1237 = vmatpush1.bf16.msra.mxu1 %v2035_v50 }
  0x2c   :  { %1152 = vmatprep.subr.bf16.mxu0 %v2040_v41  ;;  %1238 = vmatprep.subr.bf16.mxu1 %v2043_v52 }
  0x2f   :  { %1153 = vmatpush1.bf16.msra.mxu0 %v2038_v43  ;;  %1239 = vmatpush1.bf16.msra.mxu1 %v2041_v54 }
  0x30   :  { %1154 = vmatprep.subr.bf16.mxu0 %v2046_v45  ;;  %1240 = vmatprep.subr.bf16.mxu1 %v2049_v56 }
  0x33   :  { %1155 = vmatpush1.bf16.msra.mxu0 %v2044_v47  ;;  %1241 = vmatpush1.bf16.msra.mxu1 %v2047_v58 }
  0x34   :  { %1156 = vmatprep.subr.bf16.mxu0 %v2052_v49  ;;  %1242 = vmatprep.subr.bf16.mxu1 %v2055_v60 }
  0x37   :  { %1157 = vmatpush1.bf16.msra.mxu0 %v2050_v51  ;;  %1243 = vmatpush1.bf16.msra.mxu1 %v2053_v62 }
  0x38   :  { %1158 = vmatprep.subr.bf16.mxu0 %v2058_v53  ;;  %1244 = vmatprep.subr.bf16.mxu1 %v2061_v0 }
  0x3b   :  { %1159 = vmatpush1.bf16.msra.mxu0 %v2056_v55  ;;  %1245 = vmatpush1.bf16.msra.mxu1 %v2059_v2 }
  0x3c   :  { %1160 = vmatprep.subr.bf16.mxu0 %v2064_v57  ;;  %1246 = vmatprep.subr.bf16.mxu1 %v2067_v4 }
  0x3f   :  { %1161 = vmatpush1.bf16.msra.mxu0 %v2062_v59  ;;  %1247 = vmatpush1.bf16.msra.mxu1 %v2065_v6 }
  0x40   :  { %1162 = vmatprep.subr.bf16.mxu0 %v2070_v61  ;;  %1248 = vmatprep.subr.bf16.mxu1 %v2073_v8 }
  0x43   :  { %1163 = vmatpush1.bf16.msra.mxu0 %v2068_v63  ;;  %1249 = vmatpush1.bf16.msra.mxu1 %v2071_v10 }
  0x44   :  { %1164 = vmatprep.subr.bf16.mxu0 %v2076_v1  ;;  %1250 = vmatprep.subr.bf16.mxu1 %v2079_v12 }
  0x47   :  { %1165 = vmatpush1.bf16.msra.mxu0 %v2074_v3  ;;  %1251 = vmatpush1.bf16.msra.mxu1 %v2077_v14 }
  0x48   :  { %1166 = vmatprep.subr.bf16.mxu0 %v2082_v5  ;;  %1252 = vmatprep.subr.bf16.mxu1 %v2085_v16 }
  0x4b   :  { %1167 = vmatpush1.bf16.msra.mxu0 %v2080_v7  ;;  %1253 = vmatpush1.bf16.msra.mxu1 %v2083_v17 }
  0x4c   :  { %1168 = vmatprep.subr.bf16.mxu0 %v2088_v9  ;;  %1254 = vmatprep.subr.bf16.mxu1 %v2091_v18 }
  0x4f   :  { %1169 = vmatpush1.bf16.msra.mxu0 %v2086_v11  ;;  %1255 = vmatpush1.bf16.msra.mxu1 %v2089_v19 }
  0x50   :  { %1170 = vmatprep.subr.bf16.mxu0 %v2094_v13  ;;  %1256 = vmatprep.subr.bf16.mxu1 %v2097_v20 }
  0x53   :  { %1171 = vmatpush1.bf16.msra.mxu0 %v2092_v15  ;;  %1257 = vmatpush1.bf16.msra.mxu1 %v2095_v21 }
  0x54   :  { %12 = vsyncpa [#allocation3], 0  ;;  %v2100_v22 = vld [vmem:[%s2949_s3 + $0x1a4] ss:$16 sps:$4 sm:$0xff]   ;;  %v2103_v23 = vld [vmem:[%s2949_s3 + $0x1ac] ss:$16 sps:$4 sm:$0xff]   ;;  %v64_v36 = vlaneseq }
  0x55   :  { %v2098_v24 = vld [vmem:[%s2949_s3 + $0x1a0] ss:$16 sps:$4 sm:$0xff]   ;;  %v2101_v25 = vld [vmem:[%s2949_s3 + $0x1a8] ss:$16 sps:$4 sm:$0xff]   ;;  %1172 = vmatprep.subr.bf16.mxu0 %v2100_v22  ;;  %1258 = vmatprep.subr.bf16.mxu1 %v2103_v23  ;;  %v2106_v26 = vld [vmem:[%s2949_s3 + $0x1c4] ss:$16 sps:$4 sm:$0xff]  }
  0x56   :  { %v2109_v27 = vld [vmem:[%s2949_s3 + $0x1cc] ss:$16 sps:$4 sm:$0xff]   ;;  %v2104_v28 = vld [vmem:[%s2949_s3 + $0x1c0] ss:$16 sps:$4 sm:$0xff]   ;;  %v2107_v29 = vld [vmem:[%s2949_s3 + $0x1c8] ss:$16 sps:$4 sm:$0xff]  }
  0x57   :  { %1173 = vmatpush1.bf16.msra.mxu0 %v2098_v24  ;;  %1259 = vmatpush1.bf16.msra.mxu1 %v2101_v25  ;;  %v2112_v30 = vld [vmem:[%s2949_s3 + $0x1e4] ss:$16 sps:$4 sm:$0xff]   ;;  %v2115_v31 = vld [vmem:[%s2949_s3 + $0x1ec] ss:$16 sps:$4 sm:$0xff]   ;;  %v2110_v32 = vld [vmem:[%s2949_s3 + $0x1e0] ss:$16 sps:$4 sm:$0xff]  }
  0x58   :  { %1174 = vmatprep.subr.bf16.mxu0 %v2106_v26  ;;  %1260 = vmatprep.subr.bf16.mxu1 %v2109_v27  ;;  %v2113_v33 = vld [vmem:[%s2949_s3 + $0x1e8] ss:$16 sps:$4 sm:$0xff]   ;;  %v2118_v34 = vld [vmem:[%s2949_s3 + $0x204] ss:$16 sps:$4 sm:$0xff]   ;;  %v2121_v35 = vld [vmem:[%s2949_s3 + $0x20c] ss:$16 sps:$4 sm:$0xff]  }
  0x59   :  { %v2617_v37 = vshrl.u32 %v64_v36, 7  ;;  %v62_v39 = vld [vmem:[%s2948_s2] sm:$0xf]  ;;  %v2119_v1 = vld [vmem:[%s2949_s3 + $0x208] ss:$16 sps:$4 sm:$0xff]  }
  0x5a   :  { %v2116_v0 = vld [vmem:[%s2949_s3 + $0x200] ss:$16 sps:$4 sm:$0xff]   ;;  %v2124_v3 = vld [vmem:[%s2949_s3 + $0x224] ss:$16 sps:$4 sm:$0xff]   ;;  %v2127_v4 = vld [vmem:[%s2949_s3 + $0x22c] ss:$16 sps:$4 sm:$0xff]  }
  0x5b   :  { %1175 = vmatpush1.bf16.msra.mxu0 %v2104_v28  ;;  %1261 = vmatpush1.bf16.msra.mxu1 %v2107_v29  ;;  %v66_v38 = vsub.s32 0, %v2617_v37  ;;  %v70_v40 = vsub.s32 1, %v2617_v37  ;;  %v74_v54 = vsub.s32 2, %v2617_v37  ;;  %v78_v56 = vsub.s32 3, %v2617_v37  ;;  %v2122_v6 = vld [vmem:[%s2949_s3 + $0x220] ss:$16 sps:$4 sm:$0xff]  }
  0x5c   :  { %1176 = vmatprep.subr.bf16.mxu0 %v2112_v30  ;;  %1262 = vmatprep.subr.bf16.mxu1 %v2115_v31  ;;  %v2125_v9 = vld [vmem:[%s2949_s3 + $0x228] ss:$16 sps:$4 sm:$0xff]   ;;  %v2130_v10 = vld [vmem:[%s2949_s3 + $0x244] ss:$16 sps:$4 sm:$0xff]   ;;  %v2133_v13 = vld [vmem:[%s2949_s3 + $0x24c] ss:$16 sps:$4 sm:$0xff]  }
  0x5d   :  { %v67_v41 = vrot.slane %v62_v39, %v66_v38  ;;  %v71_v42 = vrot.slane %v62_v39, %v70_v40  ;;  %v75_v62 = vrot.slane %v62_v39, %v74_v54  ;;  %v79_v2 = vrot.slane %v62_v39, %v78_v56  ;;  %v2128_v21 = vld [vmem:[%s2949_s3 + $0x240] ss:$16 sps:$4 sm:$0xff]   ;;  %v2131_v22 = vld [vmem:[%s2949_s3 + $0x248] ss:$16 sps:$4 sm:$0xff]   ;;  %v2136_v25 = vld [vmem:[%s2949_s3 + $0x264] ss:$16 sps:$4 sm:$0xff]  }
  0x5e   :  { %v2139_v26 = vld [vmem:[%s2949_s3 + $0x26c] ss:$16 sps:$4 sm:$0xff]   ;;  %v2134_v30 = vld [vmem:[%s2949_s3 + $0x260] ss:$16 sps:$4 sm:$0xff]   ;;  %v2137_v31 = vld [vmem:[%s2949_s3 + $0x268] ss:$16 sps:$4 sm:$0xff]  }
  0x5f   :  { %1177 = vmatpush1.bf16.msra.mxu0 %v2110_v32  ;;  %1263 = vmatpush1.bf16.msra.mxu1 %v2113_v33  ;;  %v2142_v33 = vld [vmem:[%s2949_s3 + $0x284] ss:$16 sps:$4 sm:$0xff]   ;;  %v2143_v36 = vld [vmem:[%s2949_s3 + $0x288] ss:$16 sps:$4 sm:$0xff]  }
  0x60   :  { %1189 = vmatprep.subr.bf16.mxu0 %v2118_v34  ;;  %1275 = vmatprep.subr.bf16.mxu1 %v2121_v35  ;;  %v2145_v34 = vld [vmem:[%s2949_s3 + $0x28c] ss:$16 sps:$4 sm:$0xff]   ;;  %v2140_v35 = vld [vmem:[%s2949_s3 + $0x280] ss:$16 sps:$4 sm:$0xff]   ;;  %v2148_v39 = vld [vmem:[%s2949_s3 + $0x2a4] ss:$16 sps:$4 sm:$0xff]  }
  0xf5   :  { %v284_v43 = vpop.f32.mrb[0].mxu0  ;;  %v327_v5 = vpop.f32.mrb[0].mxu1 }
  0xf6   :  { %v285_v44 = vadd.f32 %v284_v43, %v67_v41  ;;  %v286_v45 = vpop.f32.mrb[1].mxu0  ;;  %v328_v7 = vadd.f32 %v327_v5, %v75_v62  ;;  %v329_v8 = vpop.f32.mrb[1].mxu1  ;;  %v2149_v43 = vld [vmem:[%s2949_s3 + $0x2a8] ss:$16 sps:$4 sm:$0xff]  }
  0xf7   :  { %v287_v46 = vadd.f32 %v286_v45, %v71_v42  ;;  %v288_v47 = vpop.f32.mrb[2].mxu0  ;;  %v330_v11 = vadd.f32 %v329_v8, %v79_v2  ;;  %v331_v12 = vpop.f32.mrb[2].mxu1  ;;  %v2157_v45 = vld [vmem:[%s2949_s3 + $0x2cc] ss:$16 sps:$4 sm:$0xff]   ;;  %v2185_v5 = vld [vmem:[%s2949_s3 + $0x368] ss:$16 sps:$4 sm:$0xff]  }
  0xf8   :  { %v336_v48 = vmul.f32 0.01, %v285_v44  ;;  %v289_v49 = vadd.f32 %v288_v47, %v67_v41  ;;  %v290_v50 = vpop.f32.mrb[3].mxu0  ;;  %v338_v14 = vmul.f32 0.01, %v328_v7  ;;  %v332_v15 = vadd.f32 %v331_v12, %v75_v62  ;;  %v333_v16 = vpop.f32.mrb[3].mxu1 }
  0xf9   :  { %v337_v51 = vmul.f32 0.01, %v287_v46  ;;  %v291_v52 = vadd.f32 %v290_v50, %v71_v42  ;;  %v339_v17 = vmul.f32 0.01, %v330_v11  ;;  %v334_v18 = vadd.f32 %v333_v16, %v79_v2  ;;  %v2151_v41 = vld [vmem:[%s2949_s3 + $0x2ac] ss:$16 sps:$4 sm:$0xff]  }
  0xfa   :  { %v340_v53 = vmul.f32 0.01, %v289_v49  ;;  %v344_v57 = vmax.f32 %v285_v44, %v336_v48  ;;  %v346_v19 = vmax.f32 %v328_v7, %v338_v14  ;;  %v342_v20 = vmul.f32 0.01, %v332_v15  ;;  %v2146_v42 = vld [vmem:[%s2949_s3 + $0x2a0] ss:$16 sps:$4 sm:$0xff]  }
  0xfb   :  { %v341_v55 = vmul.f32 0.01, %v291_v52  ;;  %v345_v59 = vmax.f32 %v287_v46, %v337_v51  ;;  %v347_v23 = vmax.f32 %v330_v11, %v339_v17  ;;  %v343_v24 = vmul.f32 0.01, %v334_v18  ;;  %v2154_v44 = vld [vmem:[%s2949_s3 + $0x2c4] ss:$16 sps:$4 sm:$0xff]  }
  0xfc   :  { %v348_v58 = vmax.f32 %v289_v49, %v340_v53  ;;  %v350_v27 = vmax.f32 %v332_v15, %v342_v20  ;;  %v2152_v46 = vld [vmem:[%s2949_s3 + $0x2c0] ss:$16 sps:$4 sm:$0xff]   ;;  %v2155_v47 = vld [vmem:[%s2949_s3 + $0x2c8] ss:$16 sps:$4 sm:$0xff]   ;;  %v2160_v48 = vld [vmem:[%s2949_s3 + $0x2e4] ss:$16 sps:$4 sm:$0xff]  }
  0xfd   :  { %v349_v60 = vmax.f32 %v291_v52, %v341_v55  ;;  %v351_v28 = vmax.f32 %v334_v18, %v343_v24  ;;  %v2163_v49 = vld [vmem:[%s2949_s3 + $0x2ec] ss:$16 sps:$4 sm:$0xff]   ;;  %v2158_v50 = vld [vmem:[%s2949_s3 + $0x2e0] ss:$16 sps:$4 sm:$0xff]   ;;  %v2161_v51 = vld [vmem:[%s2949_s3 + $0x2e8] ss:$16 sps:$4 sm:$0xff]  }
  0xfe   :  { %v352_v61 = vpack.c.bf16 %v348_v58, %v344_v57  ;;  %v2670_v29 = vpack.c.bf16 %v350_v27, %v346_v19  ;;  %v2166_v52 = vld [vmem:[%s2949_s3 + $0x304] ss:$16 sps:$4 sm:$0xff]   ;;  %v2169_v53 = vld [vmem:[%s2949_s3 + $0x30c] ss:$16 sps:$4 sm:$0xff]   ;;  %v2164_v55 = vld [vmem:[%s2949_s3 + $0x300] ss:$16 sps:$4 sm:$0xff]  }
  0xff   :  { %v353_v63 = vpack.c.bf16 %v349_v60, %v345_v59  ;;  %v355_v32 = vpack.c.bf16 %v351_v28, %v347_v23  ;;  %v2167_v57 = vld [vmem:[%s2949_s3 + $0x308] ss:$16 sps:$4 sm:$0xff]   ;;  %v2172_v58 = vld [vmem:[%s2949_s3 + $0x324] ss:$16 sps:$4 sm:$0xff]   ;;  %v2175_v59 = vld [vmem:[%s2949_s3 + $0x32c] ss:$16 sps:$4 sm:$0xff]  }
 0x100   :  { %v2170_v60 = vld [vmem:[%s2949_s3 + $0x320] ss:$16 sps:$4 sm:$0xff]   ;;  %v2178_v62 = vld [vmem:[%s2949_s3 + $0x344] ss:$16 sps:$4 sm:$0xff]   ;;  %v2193_v7 = vld [vmem:[%s2949_s3 + $0x38c] ss:$16 sps:$4 sm:$0xff]  }
 0x101   :  { %1178 = vmatprep.mubr.bf16.mxu0 %v353_v63  ;;  %1264 = vmatprep.mubr.bf16.mxu1 %v353_v63  ;;  %v2181_v63 = vld [vmem:[%s2949_s3 + $0x34c] ss:$16 sps:$4 sm:$0xff]   ;;  %v2184_v2 = vld [vmem:[%s2949_s3 + $0x364] ss:$16 sps:$4 sm:$0xff]   ;;  %v2188_v8 = vld [vmem:[%s2949_s3 + $0x380] ss:$16 sps:$4 sm:$0xff]  }
 0x102   :  { %1179 = vmatmul.mubr.bf16.vlgmr.msra.gmra.mrb[4].mxu0 %v352_v61  ;;  %1265 = vmatmul.mubr.bf16.vlgmr.msra.gmra.mrb[4].mxu1 %v352_v61  ;;  %v2173_v61 = vld [vmem:[%s2949_s3 + $0x328] ss:$16 sps:$4 sm:$0xff]   ;;  %v2199_v11 = vld [vmem:[%s2949_s3 + $0x3ac] ss:$16 sps:$4 sm:$0xff]   ;;  %v2194_v12 = vld [vmem:[%s2949_s3 + $0x3a0] ss:$16 sps:$4 sm:$0xff]  }
 0x103   :  { %1190 = vmatpush1.bf16.msra.mxu0 %v2116_v0  ;;  %1276 = vmatpush1.bf16.msra.mxu1 %v2119_v1  ;;  %v2176_v0 = vld [vmem:[%s2949_s3 + $0x340] ss:$16 sps:$4 sm:$0xff]   ;;  %v2179_v1 = vld [vmem:[%s2949_s3 + $0x348] ss:$16 sps:$4 sm:$0xff]   ;;  %v2202_v14 = vld [vmem:[%s2949_s3 + $0x3c4] ss:$16 sps:$4 sm:$0xff]  }
 0x104   :  { %1191 = vmatprep.subr.bf16.mxu0 %v2124_v3  ;;  %1277 = vmatprep.subr.bf16.mxu1 %v2127_v4  ;;  %v2187_v3 = vld [vmem:[%s2949_s3 + $0x36c] ss:$16 sps:$4 sm:$0xff]   ;;  %v2182_v4 = vld [vmem:[%s2949_s3 + $0x360] ss:$16 sps:$4 sm:$0xff]   ;;  %v2203_v17 = vld [vmem:[%s2949_s3 + $0x3c8] ss:$16 sps:$4 sm:$0xff]  }
 0x105   :  { %1221 = vmatprep.mubr.bf16.mxu0 %v355_v32  ;;  %1307 = vmatprep.mubr.bf16.mxu1 %v355_v32  ;;  %v2205_v15 = vld [vmem:[%s2949_s3 + $0x3cc] ss:$16 sps:$4 sm:$0xff]   ;;  %v2200_v16 = vld [vmem:[%s2949_s3 + $0x3c0] ss:$16 sps:$4 sm:$0xff]   ;;  %v2208_v18 = vld [vmem:[%s2949_s3 + $0x3e4] ss:$16 sps:$4 sm:$0xff]  }
 0x106   :  { %v2211_v19 = vld [vmem:[%s2949_s3 + $0x3ec] ss:$16 sps:$4 sm:$0xff]   ;;  %v2206_v20 = vld [vmem:[%s2949_s3 + $0x3e0] ss:$16 sps:$4 sm:$0xff]  }
 0x107   :  { %1192 = vmatpush1.bf16.msra.mxu0 %v2122_v6  ;;  %1278 = vmatpush1.bf16.msra.mxu1 %v2125_v9  ;;  %v2190_v6 = vld [vmem:[%s2949_s3 + $0x384] ss:$16 sps:$4 sm:$0xff]   ;;  %v2191_v9 = vld [vmem:[%s2949_s3 + $0x388] ss:$16 sps:$4 sm:$0xff]  }
 0x108   :  { %1193 = vmatprep.subr.bf16.mxu0 %v2130_v10  ;;  %1279 = vmatprep.subr.bf16.mxu1 %v2133_v13  ;;  %v2196_v10 = vld [vmem:[%s2949_s3 + $0x3a4] ss:$16 sps:$4 sm:$0xff]   ;;  %v2197_v13 = vld [vmem:[%s2949_s3 + $0x3a8] ss:$16 sps:$4 sm:$0xff]  }
 0x109   :  { %v2213_v23 = vld [vmem:[%s2951_s5 + $0xc0] sm:$0xff]   ;;  %v2217_v27 = vld [vmem:[%s2951_s5 + $0xc8] sm:$0xff]   ;;  %v2222_v32 = vld [vmem:[%s2951_s5 + $0x10] sm:$0xff]  }
 0x10a   :  { %v2214_v24 = vld [vmem:[%s2951_s5] sm:$0xff]   ;;  %v2218_v28 = vld [vmem:[%s2951_s5 + $0x8] sm:$0xff]  }
 0x10b   :  { %1194 = vmatpush1.bf16.msra.mxu0 %v2128_v21  ;;  %1280 = vmatpush1.bf16.msra.mxu1 %v2131_v22  ;;  %v2209_v21 = vld [vmem:[%s2949_s3 + $0x3e8] ss:$16 sps:$4 sm:$0xff]   ;;  %v2212_v22 = vld [vmem:[%s2951_s5 + $0x40] sm:$0xff]  }
 0x10c   :  { %1195 = vmatprep.subr.bf16.mxu0 %v2136_v25  ;;  %1281 = vmatprep.subr.bf16.mxu1 %v2139_v26  ;;  %v2215_v25 = vld [vmem:[%s2951_s5 + $0x80] sm:$0xff]   ;;  %v2216_v26 = vld [vmem:[%s2951_s5 + $0x48] sm:$0xff]  }
 0x10f   :  { %1196 = vmatpush1.bf16.msra.mxu0 %v2134_v30  ;;  %1282 = vmatpush1.bf16.msra.mxu1 %v2137_v31  ;;  %v2219_v30 = vld [vmem:[%s2951_s5 + $0x88] sm:$0xff]   ;;  %v2220_v31 = vld [vmem:[%s2951_s5 + $0x50] sm:$0xff]  }
 0x110   :  { %1197 = vmatprep.subr.bf16.mxu0 %v2142_v33  ;;  %1283 = vmatprep.subr.bf16.mxu1 %v2145_v34  ;;  %v2223_v33 = vld [vmem:[%s2951_s5 + $0x90] sm:$0xff]   ;;  %v2224_v34 = vld [vmem:[%s2951_s5 + $0x58] sm:$0xff]  }
 0x113   :  { %1198 = vmatpush1.bf16.msra.mxu0 %v2140_v35  ;;  %1284 = vmatpush1.bf16.msra.mxu1 %v2143_v36  ;;  %v2225_v35 = vld [vmem:[%s2951_s5 + $0xd8] sm:$0xff]  }
 0x114   :  { %1199 = vmatprep.subr.bf16.mxu0 %v2148_v39  ;;  %1285 = vmatprep.subr.bf16.mxu1 %v2151_v41  ;;  %v2226_v36 = vld [vmem:[%s2951_s5 + $0x18] sm:$0xff]   ;;  %v2228_v41 = vld [vmem:[%s2951_s5 + $0x60] sm:$0xff]  }
 0x115   :  { %v2227_v39 = vld [vmem:[%s2951_s5 + $0x98] sm:$0xff]  }
 0x117   :  { %1200 = vmatpush1.bf16.msra.mxu0 %v2146_v42  ;;  %1286 = vmatpush1.bf16.msra.mxu1 %v2149_v43  ;;  %v2229_v42 = vld [vmem:[%s2951_s5 + $0xe0] sm:$0xff]  }
 0x118   :  { %1201 = vmatprep.subr.bf16.mxu0 %v2154_v44  ;;  %1287 = vmatprep.subr.bf16.mxu1 %v2157_v45  ;;  %v2230_v43 = vld [vmem:[%s2951_s5 + $0x20] sm:$0xff]   ;;  %v2232_v45 = vld [vmem:[%s2951_s5 + $0x68] sm:$0xff]  }
 0x119   :  { %v2231_v44 = vld [vmem:[%s2951_s5 + $0xa0] sm:$0xff]  }
 0x11b   :  { %1202 = vmatpush1.bf16.msra.mxu0 %v2152_v46  ;;  %1288 = vmatpush1.bf16.msra.mxu1 %v2155_v47  ;;  %v2233_v46 = vld [vmem:[%s2951_s5 + $0xe8] sm:$0xff]  }
 0x11c   :  { %1203 = vmatprep.subr.bf16.mxu0 %v2160_v48  ;;  %1289 = vmatprep.subr.bf16.mxu1 %v2163_v49  ;;  %v2234_v47 = vld [vmem:[%s2951_s5 + $0x28] sm:$0xff]   ;;  %v2236_v49 = vld [vmem:[%s2951_s5 + $0x70] sm:$0xff]  }
 0x11d   :  { %v2235_v48 = vld [vmem:[%s2951_s5 + $0xa8] sm:$0xff]  }
 0x11f   :  { %1204 = vmatpush1.bf16.msra.mxu0 %v2158_v50  ;;  %1290 = vmatpush1.bf16.msra.mxu1 %v2161_v51  ;;  %v2237_v50 = vld [vmem:[%s2951_s5 + $0xf0] sm:$0xff]  }
 0x120   :  { %1205 = vmatprep.subr.bf16.mxu0 %v2166_v52  ;;  %1291 = vmatprep.subr.bf16.mxu1 %v2169_v53  ;;  %v2238_v51 = vld [vmem:[%s2951_s5 + $0x30] sm:$0xff]   ;;  %v2240_v53 = vld [vmem:[%s2951_s5 + $0x78] sm:$0xff]  }
 0x121   :  { %v2239_v52 = vld [vmem:[%s2951_s5 + $0xb0] sm:$0xff]  }
 0x123   :  { %1206 = vmatpush1.bf16.msra.mxu0 %v2164_v55  ;;  %1292 = vmatpush1.bf16.msra.mxu1 %v2167_v57  ;;  %v2241_v55 = vld [vmem:[%s2951_s5 + $0xf8] sm:$0xff]  }
 0x124   :  { %1207 = vmatprep.subr.bf16.mxu0 %v2172_v58  ;;  %1293 = vmatprep.subr.bf16.mxu1 %v2175_v59  ;;  %v2242_v57 = vld [vmem:[%s2951_s5 + $0x38] sm:$0xff]   ;;  %v484_v59 = vld [vmem:[%s2950_s4] sm:$0xf] }
 0x125   :  { %v2243_v58 = vld [vmem:[%s2951_s5 + $0xb8] sm:$0xff]  }
 0x127   :  { %1208 = vmatpush1.bf16.msra.mxu0 %v2170_v60  ;;  %1294 = vmatpush1.bf16.msra.mxu1 %v2173_v61  ;;  %v489_v60 = vrot.slane %v484_v59, %v66_v38  ;;  %v497_v61 = vrot.slane %v484_v59, %v74_v54 }
 0x128   :  { %1209 = vmatprep.subr.bf16.mxu0 %v2178_v62  ;;  %1295 = vmatprep.subr.bf16.mxu1 %v2181_v63  ;;  %v493_v62 = vrot.slane %v484_v59, %v70_v40  ;;  %v501_v63 = vrot.slane %v484_v59, %v78_v56 }
 0x12b   :  { %1210 = vmatpush1.bf16.msra.mxu0 %v2176_v0  ;;  %1296 = vmatpush1.bf16.msra.mxu1 %v2179_v1 }
 0x12c   :  { %1211 = vmatprep.subr.bf16.mxu0 %v2184_v2  ;;  %1297 = vmatprep.subr.bf16.mxu1 %v2187_v3 }
 0x12f   :  { %1212 = vmatpush1.bf16.msra.mxu0 %v2182_v4  ;;  %1298 = vmatpush1.bf16.msra.mxu1 %v2185_v5 }
 0x130   :  { %1213 = vmatprep.subr.bf16.mxu0 %v2190_v6  ;;  %1299 = vmatprep.subr.bf16.mxu1 %v2193_v7 }
 0x133   :  { %1214 = vmatpush1.bf16.msra.mxu0 %v2188_v8  ;;  %1300 = vmatpush1.bf16.msra.mxu1 %v2191_v9 }
 0x134   :  { %1215 = vmatprep.subr.bf16.mxu0 %v2196_v10  ;;  %1301 = vmatprep.subr.bf16.mxu1 %v2199_v11 }
 0x137   :  { %1216 = vmatpush1.bf16.msra.mxu0 %v2194_v12  ;;  %1302 = vmatpush1.bf16.msra.mxu1 %v2197_v13 }
 0x138   :  { %1217 = vmatprep.subr.bf16.mxu0 %v2202_v14  ;;  %1303 = vmatprep.subr.bf16.mxu1 %v2205_v15 }
 0x13b   :  { %1218 = vmatpush1.bf16.msra.mxu0 %v2200_v16  ;;  %1304 = vmatpush1.bf16.msra.mxu1 %v2203_v17 }
 0x13c   :  { %1219 = vmatprep.subr.bf16.mxu0 %v2208_v18  ;;  %1305 = vmatprep.subr.bf16.mxu1 %v2211_v19 }
 0x13f   :  { %1220 = vmatpush1.bf16.msra.mxu0 %v2206_v20  ;;  %1306 = vmatpush1.bf16.msra.mxu1 %v2209_v21 }
 0x140   :  { %1907 = vmatprep.subr.bf16.mxu0 %v2212_v22  ;;  %1929 = vmatprep.subr.bf16.mxu1 %v2213_v23 }
 0x142   :  { %1222 = vmatmul.mubr.bf16.vlgmr.msra.gmra.mrb[4].mxu0 %v2670_v29  ;;  %1308 = vmatmul.mubr.bf16.vlgmr.msra.gmra.mrb[4].mxu1 %v2670_v29  ;;  %v2221_v29 = vld [vmem:[%s2951_s5 + $0xd0] sm:$0xff]  }
 0x143   :  { %1908 = vmatpush3.bf16.msra.mxu0 %v2214_v24  ;;  %1930 = vmatpush3.bf16.msra.mxu1 %v2215_v25 }
 0x144   :  { %1909 = vmatprep.subr.bf16.mxu0 %v2216_v26  ;;  %1931 = vmatprep.subr.bf16.mxu1 %v2217_v27 }
 0x147   :  { %1910 = vmatpush3.bf16.msra.mxu0 %v2218_v28  ;;  %1932 = vmatpush3.bf16.msra.mxu1 %v2219_v30 }
 0x148   :  { %1911 = vmatprep.subr.bf16.mxu0 %v2220_v31  ;;  %1933 = vmatprep.subr.bf16.mxu1 %v2221_v29 }
 0x14b   :  { %1912 = vmatpush3.bf16.msra.mxu0 %v2222_v32  ;;  %1934 = vmatpush3.bf16.msra.mxu1 %v2223_v33  ;;  %v1874_v33 = vld [vmem:[%s2952_s6] ss:$0 sm:$0xff]  ;;  %s2277_s6 = smov [#allocation2]  }
 0x14c   :  { %1913 = vmatprep.subr.bf16.mxu0 %v2224_v34  ;;  %1935 = vmatprep.subr.bf16.mxu1 %v2225_v35  ;;  %s1702_s10 = sshll.u32 %s2277_s6, 4  ;;  %s1703_s10 = int_to_ptr.vmem [resolvable:$true] %s1702_s10 }
 0x14d   :  { %s2252_s11 = scalar_lea.vmem %s1703_s10, 256  ;;  %p2257_p1 = scmp.lt.s32.totalorder %s1703_s10, %s1703_s10 }
 0x14e   :  { %p2253_p0 = scmp.ne.s32.totalorder %s1703_s10, %s2252_s11  ;;  %p2258_p2 = scmp.lt.s32.totalorder %s2252_s11, %s2252_s11 }
 0x14f   :  { %1914 = vmatpush3.bf16.msra.mxu0 %v2226_v36  ;;  %1936 = vmatpush3.bf16.msra.mxu1 %v2227_v39 }
 0x150   :  { %1915 = vmatprep.subr.bf16.mxu0 %v2228_v41  ;;  %1937 = vmatprep.subr.bf16.mxu1 %v2229_v42  ;;  %p2259_p3 = por %p2258_p2, %p2257_p1 }
 0x152   :  { %p2260_p4 = pnand %p2259_p3, %p2253_p0 }
 0x153   :  { %1916 = vmatpush3.bf16.msra.mxu0 %v2230_v43  ;;  %1938 = vmatpush3.bf16.msra.mxu1 %v2231_v44 }
 0x154   :  { %1917 = vmatprep.subr.bf16.mxu0 %v2232_v45  ;;  %1939 = vmatprep.subr.bf16.mxu1 %v2233_v46 }
 0x157   :  { %1918 = vmatpush3.bf16.msra.mxu0 %v2234_v47  ;;  %1940 = vmatpush3.bf16.msra.mxu1 %v2235_v48 }
 0x158   :  { %1919 = vmatprep.subr.bf16.mxu0 %v2236_v49  ;;  %1941 = vmatprep.subr.bf16.mxu1 %v2237_v50 }
 0x15b   :  { %1920 = vmatpush3.bf16.msra.mxu0 %v2238_v51  ;;  %1942 = vmatpush3.bf16.msra.mxu1 %v2239_v52 }
 0x15c   :  { %1921 = vmatprep.subr.bf16.mxu0 %v2240_v53  ;;  %1943 = vmatprep.subr.bf16.mxu1 %v2241_v55 }
 0x15f   :  { %1922 = vmatpush3.bf16.msra.mxu0 %v2242_v57  ;;  %1944 = vmatpush3.bf16.msra.mxu1 %v2243_v58 }
 0x215   :  { %v1223_v0 = vpop.f32.mrb[4].mxu0  ;;  %v1309_v1 = vpop.f32.mrb[4].mxu1 }
 0x216   :  { %v1951_v2 = vadd.f32 %v1223_v0, %v489_v60  ;;  %v1955_v3 = vadd.f32 %v1309_v1, %v497_v61  ;;  %v1225_v4 = vpop.f32.mrb[5].mxu0  ;;  %v1311_v5 = vpop.f32.mrb[5].mxu1 }
 0x217   :  { %v1952_v6 = vadd.f32 %v1225_v4, %v493_v62  ;;  %v1956_v7 = vadd.f32 %v1311_v5, %v501_v63  ;;  %v1227_v8 = vpop.f32.mrb[6].mxu0  ;;  %v1313_v9 = vpop.f32.mrb[6].mxu1 }
 0x218   :  { %v1318_v38 = vmul.f32 0.01, %v1951_v2  ;;  %v1320_v10 = vmul.f32 0.01, %v1955_v3  ;;  %v1953_v11 = vadd.f32 %v1227_v8, %v489_v60  ;;  %v1957_v54 = vadd.f32 %v1313_v9, %v497_v61  ;;  %v1229_v12 = vpop.f32.mrb[7].mxu0  ;;  %v1315_v13 = vpop.f32.mrb[7].mxu1 }
 0x219   :  { %v1319_v40 = vmul.f32 0.01, %v1952_v6  ;;  %v1321_v14 = vmul.f32 0.01, %v1956_v7  ;;  %v1954_v37 = vadd.f32 %v1229_v12, %v493_v62  ;;  %v1958_v56 = vadd.f32 %v1315_v13, %v501_v63 }
 0x21a   :  { %v1322_v15 = vmul.f32 0.01, %v1953_v11  ;;  %v1324_v16 = vmul.f32 0.01, %v1957_v54  ;;  %v1326_v19 = vmax.f32 %v1951_v2, %v1318_v38  ;;  %v1328_v20 = vmax.f32 %v1955_v3, %v1320_v10 }
 0x21b   :  { %v1323_v17 = vmul.f32 0.01, %v1954_v37  ;;  %v1325_v18 = vmul.f32 0.01, %v1958_v56  ;;  %v1327_v23 = vmax.f32 %v1952_v6, %v1319_v40  ;;  %v1329_v24 = vmax.f32 %v1956_v7, %v1321_v14 }
 0x21c   :  { %v1330_v21 = vmax.f32 %v1953_v11, %v1322_v15  ;;  %v1332_v22 = vmax.f32 %v1957_v54, %v1324_v16 }
 0x21d   :  { %v1331_v25 = vmax.f32 %v1954_v37, %v1323_v17  ;;  %v1333_v26 = vmax.f32 %v1958_v56, %v1325_v18 }
 0x21e   :  { %v1334_v27 = vpack.c.bf16 %v1330_v21, %v1326_v19  ;;  %v1336_v28 = vpack.c.bf16 %v1332_v22, %v1328_v20 }
 0x21f   :  { %v1335_v30 = vpack.c.bf16 %v1331_v25, %v1327_v23  ;;  %v1337_v31 = vpack.c.bf16 %v1333_v26, %v1329_v24 }
 0x221   :  { %1633 = vmatprep.mubr.bf16.mxu0 %v1335_v30  ;;  %1674 = vmatprep.mubr.bf16.mxu1 %v1337_v31 }
 0x222   :  { %1634 = vmatmul.mubr.bf16.vlgmr.msra.gmra.mrb[8].mxu0 %v1334_v27  ;;  %1675 = vmatmul.mubr.bf16.vlgmr.msra.gmra.mrb[8].mxu1 %v1336_v28 }
 0x2f5   :  { %v1923_v29 = vpop.f32.mrb[8].mxu0  ;;  %v1945_v32 = vpop.f32.mrb[8].mxu1 }
 0x2f6   :  { %v1924_v34 = vpop.f32.mrb[9].mxu0  ;;  %v1946_v35 = vpop.f32.mrb[9].mxu1 }
 0x2f7   :  { %v1925_v36 = vadd.f32 %v1924_v34, %v1923_v29  ;;  %v1947_v39 = vadd.f32 %v1946_v35, %v1945_v32  ;;  %v1926_v41 = vpop.f32.mrb[10].mxu0  ;;  %v1948_v42 = vpop.f32.mrb[10].mxu1 }
 0x2f8   :  { %v1927_v43 = vpop.f32.mrb[11].mxu0  ;;  %v1949_v44 = vpop.f32.mrb[11].mxu1 }
 0x2f9   :  { %v1636_v45 = vadd.f32 %v1925_v36, %v1874_v33  ;;  %v1928_v46 = vadd.f32 %v1927_v43, %v1926_v41  ;;  %v1950_v47 = vadd.f32 %v1949_v44, %v1948_v42 }
 0x2fb   :  { %v1677_v48 = vadd.f32 %v1947_v39, %v1636_v45  ;;  %v1639_v49 = vadd.f32 %v1928_v46, %v1874_v33 }
 0x2fd   :  { %2244 = vtanh.f32 %v1677_v48  ;;  %v1680_v50 = vadd.f32 %v1950_v47, %v1639_v49 }
 0x2ff   :  { %2246 = vtanh.f32 %v1680_v50 }
 0x307   :  { %v2245_v51 = vpop.eup %2244 }
 0x308   :  { %v1685_v52 = vmul.f32 %v2245_v51, %v2245_v51 }
 0x309   :  { %v2247_v53 = vpop.eup %2246 }
 0x30a   :  { %1687 = vadd.xlane.f32.xlu0 %v1685_v52  ;;  %v1686_v55 = vmul.f32 %v2247_v53, %v2247_v53 }
 0x30e   :  { %1689 = vadd.xlane.f32.xlu0 %v1686_v55 }
 0x397   :  { %v1688_v57 = vpop.xlane.xlu0 %1687 }
 0x398   :  { %2248 = vrsqrt.f32 %v1688_v57 }
 0x39b   :  { %v1690_v58 = vpop.xlane.xlu0 %1689 }
 0x39c   :  { %2250 = vrsqrt.f32 %v1690_v58 }
 0x3a2   :  { %v2249_v59 = vpop.eup %2248 }
 0x3a3   :  { %v1693_v60 = vmul.f32 %v2249_v59, %v2245_v51 }
 0x3a5   :  { %1695 = vst [vmem:[#allocation2] sm:$0xff] %v1693_v60 }
 0x3a6   :  { %v2251_v61 = vpop.eup %2250 }
 0x3a7   :  { %v1694_v62 = vmul.f32 %v2251_v61, %v2247_v53 }
 0x3a9   :  { %1696 = vst [vmem:[#allocation2 + $0x8] sm:$0xff] %v1694_v62 }
 0x3aa   :  { %2263 = shalt.err (!%p2260_p4)
}
 0x3ab   :  { %s2264_s14 = scalar_lea.hbm %s2953_s7, 256 }
 0x3ac   :  { %p2265_p5 = scmp.ne.s32.totalorder %s2953_s7, %s2264_s14  ;;  %p2268_p6 = scmp.lt.u32.totalorder %s2264_s14, %s2953_s7 }
 0x3ae   :  { %p2270_p7 = pnand %p2268_p6, %p2265_p5 }
 0x3b0   :  { %2273 = shalt.err (!%p2270_p7)
}
 0x3b1   :  { %s2278_s18 = smov 128   ;;  %s2279_s19 = smov 8  }
 0x3b2   :  { %1708 = dma.vmem_to_hbm [thread:$0]  %s1703_s10, 256, %s2953_s7, [#allocation3], %s2278_s18, %s2278_s18, %s2279_s19  }
 0x3b3   :  { %2274 = dma.done.wait [#allocation3], 256  }
 0x3b4   :  { %2275 = vsyncadd [#allocation3], 4294967040 }
 0x3b5   :  { %1712 = vsyncpa [#allocation3], 1 }

</bundles_post_ra>
